<compile_context>
chip_gen: v5e
topology: v5e:2x2
jax: 0.10.0
libtpu: 0.0.40
codegen_flags: <defaults>
</compile_context>

<pallas_src>
import functools
import math

import jax
import jax.numpy as jnp
from jax.experimental import pallas as pl
from jax.experimental.pallas import tpu as pltpu

HIDDEN = 20
H_PAD = 128      # hidden axis padded to a full lane width (dense vregs)
NA_PAD = 128     # class axis padded to a full lane width (unmasked output vst)
NEG_BIG = -1e30  # class-axis bias pad value; vanishes from the logsumexp


def _round_up(a, m):
    return (a + m - 1) // m * m


def actor_kernel(x_ref, w1_ref, b1_ref, w2_ref, b2_ref, w3_ref, b3_ref, o_ref):
    """Fused Linear->Tanh->Linear->Tanh->Linear->log_softmax on one batch tile."""
    x = x_ref[...]

    h1 = jnp.tanh(
        jnp.dot(x, w1_ref[...], preferred_element_type=jnp.float32) + b1_ref[...])
    h2 = jnp.tanh(
        jnp.dot(h1, w2_ref[...], preferred_element_type=jnp.float32) + b2_ref[...])
    logits = (jnp.dot(h2, w3_ref[...], preferred_element_type=jnp.float32)
              + b3_ref[...])

    # Padded class lanes carry a -1e30 bias, so they drop out of the max and
    # the sum exactly (exp underflows to 0) -- no in-kernel mask is required.
    m = jnp.max(logits, axis=1, keepdims=True)
    z = logits - m
    lse = jnp.log(jnp.sum(jnp.exp(z), axis=1, keepdims=True))
    o_ref[...] = z - lse


@functools.partial(jax.jit, static_argnames=("tb",))
def actor_forward(x, params, *, tb=1024):
    """Fused Actor forward. x: [B, nS] f32 -> [B, nA] f32 log-probabilities."""
    w1, b1, w2, b2, w3, b3 = params
    B, nS = x.shape
    H = w1.shape[1]
    nA = w3.shape[1]

    # Batch tile: multiple of 8 sublanes, capped by (padded) B; large default to
    # amortize the ~0.35us per-grid-step overhead on big batches.
    TB = min(_round_up(tb, 8), _round_up(B, 8))
    B_pad = _round_up(B, TB)
    grid = (pl.cdiv(B_pad, TB),)

    # Pad batch rows with zeros (sliced off below).  Pad the hidden axis to 128
    # (exact: zero weights/bias + tanh(0)=0 keep padded lanes at 0) and the
    # class axis to 128 (padded bias = -1e30 removes those lanes from softmax).
    x_p = jnp.pad(x, ((0, B_pad - B), (0, 0)))
    w1_p = jnp.pad(w1, ((0, 0), (0, H_PAD - H)))
    b1_p = jnp.pad(b1, ((0, 0), (0, H_PAD - H)))
    w2_p = jnp.pad(w2, ((0, H_PAD - H), (0, H_PAD - H)))
    b2_p = jnp.pad(b2, ((0, 0), (0, H_PAD - H)))
    w3_p = jnp.pad(w3, ((0, H_PAD - H), (0, NA_PAD - nA)))
    b3_p = jnp.pad(b3, ((0, 0), (0, NA_PAD - nA)), constant_values=NEG_BIG)

    # Weights/biases stay resident in VMEM across the whole grid.
    resident = lambda shape: pl.BlockSpec(shape, lambda i: (0, 0))

    flops = 2 * B_pad * (nS * H_PAD + H_PAD * H_PAD + H_PAD * NA_PAD)
    transcendentals = B_pad * (2 * H_PAD + NA_PAD)  # tanh x2 + exp in softmax
    bytes_accessed = 4 * (B_pad * nS + nS * H_PAD + H_PAD + H_PAD * H_PAD + H_PAD
                          + H_PAD * NA_PAD + NA_PAD + B_pad * NA_PAD)

    out_padded = pl.pallas_call(
        actor_kernel,
        out_shape=jax.ShapeDtypeStruct((B_pad, NA_PAD), jnp.float32),
        grid_spec=pltpu.PrefetchScalarGridSpec(
            num_scalar_prefetch=0,
            grid=grid,
            in_specs=[
                pl.BlockSpec((TB, nS), lambda i: (i, 0)),   # x tile (pipelined)
                resident((nS, H_PAD)),                      # w1
                resident((1, H_PAD)),                       # b1
                resident((H_PAD, H_PAD)),                   # w2
                resident((1, H_PAD)),                       # b2
                resident((H_PAD, NA_PAD)),                  # w3
                resident((1, NA_PAD)),                      # b3 (-1e30 pad lanes)
            ],
            out_specs=pl.BlockSpec((TB, NA_PAD), lambda i: (i, 0)),
        ),
        compiler_params=pltpu.CompilerParams(
            dimension_semantics=("parallel",),  # shard batch tiles over TCs on v7x
        ),
        cost_estimate=pl.CostEstimate(
            flops=flops,
            transcendentals=transcendentals,
            bytes_accessed=bytes_accessed,
        ),
    )(x_p, w1_p, b1_p, w2_p, b2_p, w3_p, b3_p)

    return out_padded[:B, :nA]


def init_linear(key, fan_in, fan_out):
    # PyTorch nn.Linear default init: U(-1/sqrt(fan_in), 1/sqrt(fan_in)).
    kw, kb = jax.random.split(key)
    bound = 1.0 / math.sqrt(fan_in)
    w = jax.random.uniform(kw, (fan_in, fan_out), jnp.float32, -bound, bound)
    b = jax.random.uniform(kb, (1, fan_out), jnp.float32, -bound, bound)
    return w, b


def init_actor_params(key, nS, nA, hidden=HIDDEN):
    k1, k2, k3 = jax.random.split(key, 3)
    w1, b1 = init_linear(k1, nS, hidden)
    w2, b2 = init_linear(k2, hidden, hidden)
    w3, b3 = init_linear(k3, hidden, nA)
    return (w1, b1, w2, b2, w3, b3)


def actor_reference(x, params):
    # Pure-JAX reference for correctness checking.
    w1, b1, w2, b2, w3, b3 = params
    h1 = jnp.tanh(x @ w1 + b1)
    h2 = jnp.tanh(h1 @ w2 + b2)
    logits = h2 @ w3 + b3
    return jax.nn.log_softmax(logits, axis=1)


if __name__ == "__main__":
    key = jax.random.PRNGKey(0)
    k_params, k_x1, k_x2 = jax.random.split(key, 3)

    nS, nA = 32, 6
    params = init_actor_params(k_params, nS, nA)

    # Small case consistent with Actor(nS, nA): single grid step.
    B = 8
    x = jax.random.normal(k_x1, (B, nS), jnp.float32)
    out = jax.block_until_ready(actor_forward(x, params))
    ref = actor_reference(x, params)
    assert out.shape == (B, nA)
    assert jnp.allclose(out, ref, atol=1e-5, rtol=1e-5), "mismatch vs reference"

    # Exercise the multi-step batch grid + padding path (B not a tile multiple).
    B2 = 20
    x2 = jax.random.normal(k_x2, (B2, nS), jnp.float32)
    out2 = jax.block_until_ready(actor_forward(x2, params, tb=8))
    ref2 = actor_reference(x2, params)
    assert out2.shape == (B2, nA)
    assert jnp.allclose(out2, ref2, atol=1e-5, rtol=1e-5), "mismatch vs reference (gridded)"

    print("KERNEL_OK")
</pallas_src>

<mosaic_0001>
module attributes {stable_mosaic.version = 11 : i64} {
  func.func @actor_kernel(%arg0: i32, %arg1: memref<8x32xf32, #tpu.memory_space<vmem>>, %arg2: memref<32x128xf32, #tpu.memory_space<vmem>>, %arg3: memref<1x128xf32, #tpu.memory_space<vmem>>, %arg4: memref<128x128xf32, #tpu.memory_space<vmem>>, %arg5: memref<1x128xf32, #tpu.memory_space<vmem>>, %arg6: memref<128x128xf32, #tpu.memory_space<vmem>>, %arg7: memref<1x128xf32, #tpu.memory_space<vmem>>, %arg8: memref<8x128xf32, #tpu.memory_space<vmem>>) attributes {dimension_semantics = [#tpu.dimension_semantics<parallel>], iteration_bounds = array<i64: 1>, scalar_prefetch = 0 : i64, scratch_operands = 0 : i64, tpu.core_type = #tpu.core_type<tc>, window_params = [{transform_indices = @transform_0, window_bounds = array<i64: 8, 32>}, {pipeline_mode = #tpu.pipeline_mode<synchronous>, transform_indices = @transform_1, window_bounds = array<i64: 32, 128>}, {pipeline_mode = #tpu.pipeline_mode<synchronous>, transform_indices = @transform_2, window_bounds = array<i64: 1, 128>}, {pipeline_mode = #tpu.pipeline_mode<synchronous>, transform_indices = @transform_3, window_bounds = array<i64: 128, 128>}, {pipeline_mode = #tpu.pipeline_mode<synchronous>, transform_indices = @transform_4, window_bounds = array<i64: 1, 128>}, {pipeline_mode = #tpu.pipeline_mode<synchronous>, transform_indices = @transform_5, window_bounds = array<i64: 128, 128>}, {pipeline_mode = #tpu.pipeline_mode<synchronous>, transform_indices = @transform_6, window_bounds = array<i64: 1, 128>}, {transform_indices = @transform_7, window_bounds = array<i64: 8, 128>}]} {
    %c0 = arith.constant 0 : index
    %c0_0 = arith.constant 0 : index
    %0 = vector.load %arg1[%c0, %c0_0] : memref<8x32xf32, #tpu.memory_space<vmem>>, vector<8x32xf32>
    %c0_1 = arith.constant 0 : index
    %c0_2 = arith.constant 0 : index
    %1 = vector.load %arg2[%c0_1, %c0_2] : memref<32x128xf32, #tpu.memory_space<vmem>>, vector<32x128xf32>
    %cst = arith.constant dense<0.000000e+00> : vector<8x128xf32>
    %2 = tpu.matmul %0, %1, %cst {dimension_numbers = #tpu.dot_dimension_numbers<[1], [0], [0], [1], [0, 0, 1, 1], [], []>} : vector<8x32xf32>, vector<32x128xf32>, vector<8x128xf32> -> vector<8x128xf32>
    %c0_3 = arith.constant 0 : index
    %c0_4 = arith.constant 0 : index
    %3 = vector.load %arg3[%c0_3, %c0_4] : memref<1x128xf32, #tpu.memory_space<vmem>>, vector<1x128xf32>
    %4 = vector.broadcast %3 : vector<1x128xf32> to vector<8x128xf32>
    %5 = arith.addf %2, %4 : vector<8x128xf32>
    %6 = math.tanh %5 : vector<8x128xf32>
    %c0_5 = arith.constant 0 : index
    %c0_6 = arith.constant 0 : index
    %7 = vector.load %arg4[%c0_5, %c0_6] : memref<128x128xf32, #tpu.memory_space<vmem>>, vector<128x128xf32>
    %cst_7 = arith.constant dense<0.000000e+00> : vector<8x128xf32>
    %8 = tpu.matmul %6, %7, %cst_7 {dimension_numbers = #tpu.dot_dimension_numbers<[1], [0], [0], [1], [0, 0, 1, 1], [], []>} : vector<8x128xf32>, vector<128x128xf32>, vector<8x128xf32> -> vector<8x128xf32>
    %c0_8 = arith.constant 0 : index
    %c0_9 = arith.constant 0 : index
    %9 = vector.load %arg5[%c0_8, %c0_9] : memref<1x128xf32, #tpu.memory_space<vmem>>, vector<1x128xf32>
    %10 = vector.broadcast %9 : vector<1x128xf32> to vector<8x128xf32>
    %11 = arith.addf %8, %10 : vector<8x128xf32>
    %12 = math.tanh %11 : vector<8x128xf32>
    %c0_10 = arith.constant 0 : index
    %c0_11 = arith.constant 0 : index
    %13 = vector.load %arg6[%c0_10, %c0_11] : memref<128x128xf32, #tpu.memory_space<vmem>>, vector<128x128xf32>
    %cst_12 = arith.constant dense<0.000000e+00> : vector<8x128xf32>
    %14 = tpu.matmul %12, %13, %cst_12 {dimension_numbers = #tpu.dot_dimension_numbers<[1], [0], [0], [1], [0, 0, 1, 1], [], []>} : vector<8x128xf32>, vector<128x128xf32>, vector<8x128xf32> -> vector<8x128xf32>
    %c0_13 = arith.constant 0 : index
    %c0_14 = arith.constant 0 : index
    %15 = vector.load %arg7[%c0_13, %c0_14] : memref<1x128xf32, #tpu.memory_space<vmem>>, vector<1x128xf32>
    %16 = vector.broadcast %15 : vector<1x128xf32> to vector<8x128xf32>
    %17 = arith.addf %14, %16 : vector<8x128xf32>
    %cst_15 = arith.constant dense<0xFF800000> : vector<8xf32>
    %18 = vector.multi_reduction <maximumf>, %17, %cst_15 [1] : vector<8x128xf32> to vector<8xf32>
    %19 = vector.shape_cast %18 : vector<8xf32> to vector<8x1xf32>
    %20 = vector.broadcast %19 : vector<8x1xf32> to vector<8x128xf32>
    %21 = arith.subf %17, %20 : vector<8x128xf32>
    %22 = math.exp %21 : vector<8x128xf32>
    %cst_16 = arith.constant dense<0.000000e+00> : vector<8xf32>
    %23 = vector.multi_reduction <add>, %22, %cst_16 [1] : vector<8x128xf32> to vector<8xf32>
    %24 = vector.shape_cast %23 : vector<8xf32> to vector<8x1xf32>
    %25 = math.log %24 : vector<8x1xf32>
    %26 = vector.broadcast %25 : vector<8x1xf32> to vector<8x128xf32>
    %27 = arith.subf %21, %26 : vector<8x128xf32>
    %c0_17 = arith.constant 0 : index
    %c0_18 = arith.constant 0 : index
    %28 = vector.load %arg8[%c0_17, %c0_18] : memref<8x128xf32, #tpu.memory_space<vmem>>, vector<8x128xf32>
    tpu.vector_store %arg8[%c0_17, %c0_18], %27 {strides = array<i32>} : memref<8x128xf32, #tpu.memory_space<vmem>>, vector<8x128xf32>,
    return
  }
  func.func @transform_0(%arg0: i32) -> (i32, i32) {
    %c0_i32 = arith.constant 0 : i32
    %c0_i32_0 = arith.constant 0 : i32
    return %arg0, %c0_i32 : i32, i32
  }
  func.func @transform_1(%arg0: i32) -> (i32, i32) {
    %c0_i32 = arith.constant 0 : i32
    %c0_i32_0 = arith.constant 0 : i32
    %c0_i32_1 = arith.constant 0 : i32
    return %c0_i32, %c0_i32_0 : i32, i32
  }
  func.func @transform_2(%arg0: i32) -> (i32, i32) {
    %c0_i32 = arith.constant 0 : i32
    %c0_i32_0 = arith.constant 0 : i32
    %c0_i32_1 = arith.constant 0 : i32
    return %c0_i32, %c0_i32_0 : i32, i32
  }
  func.func @transform_3(%arg0: i32) -> (i32, i32) {
    %c0_i32 = arith.constant 0 : i32
    %c0_i32_0 = arith.constant 0 : i32
    %c0_i32_1 = arith.constant 0 : i32
    return %c0_i32, %c0_i32_0 : i32, i32
  }
  func.func @transform_4(%arg0: i32) -> (i32, i32) {
    %c0_i32 = arith.constant 0 : i32
    %c0_i32_0 = arith.constant 0 : i32
    %c0_i32_1 = arith.constant 0 : i32
    return %c0_i32, %c0_i32_0 : i32, i32
  }
  func.func @transform_5(%arg0: i32) -> (i32, i32) {
    %c0_i32 = arith.constant 0 : i32
    %c0_i32_0 = arith.constant 0 : i32
    %c0_i32_1 = arith.constant 0 : i32
    return %c0_i32, %c0_i32_0 : i32, i32
  }
  func.func @transform_6(%arg0: i32) -> (i32, i32) {
    %c0_i32 = arith.constant 0 : i32
    %c0_i32_0 = arith.constant 0 : i32
    %c0_i32_1 = arith.constant 0 : i32
    return %c0_i32, %c0_i32_0 : i32, i32
  }
  func.func @transform_7(%arg0: i32) -> (i32, i32) {
    %c0_i32 = arith.constant 0 : i32
    %c0_i32_0 = arith.constant 0 : i32
    return %arg0, %c0_i32 : i32, i32
  }
}

</mosaic_0001>

<bundles_post_ra>
// kernel: actor_forward.1
= control target key start
LH: loop header
LB: loop body
LE: loop exit
PB: predicated region body
PF: predicated region fallthrough
CT: control target
= control target key end

     0   :  { %vm36_vm0 = vcmask 261120   ;;  %s372_s0 = inlined_call_operand.vmem [shape: f32[8,32], index: 0, kind: input, shape index: {}]   ;;  %s373_s1 = inlined_call_operand.vmem [shape: f32[32,128], index: 1, kind: input, shape index: {}]   ;;  %s374_s2 = inlined_call_operand.vmem [shape: f32[1,128], index: 2, kind: input, shape index: {}]   ;;  %s375_s3 = inlined_call_operand.vmem [shape: f32[128,128], index: 3, kind: input, shape index: {}]   ;;  %s376_s4 = inlined_call_operand.vmem [shape: f32[1,128], index: 4, kind: input, shape index: {}]   ;;  %s377_s5 = inlined_call_operand.vmem [shape: f32[128,128], index: 5, kind: input, shape index: {}]   ;;  %s378_s6 = inlined_call_operand.vmem [shape: f32[1,128], index: 6, kind: input, shape index: {}]   ;;  %s379_s7 = inlined_call_operand.hbm [shape: f32[8,128], index: 7, kind: output, shape index: {}]  }
   0x1   :  { %v31_v0 = vld [vmem:[%s373_s1 + $0x18] sm:$0xff]  ;;  %v30_v1 = vld [vmem:[%s373_s1 + $0x10] sm:$0xff]  ;;  %v29_v3 = vld [vmem:[%s373_s1 + $0x8] sm:$0xff] }
   0x2   :  { %52 = vmatpush.msra.mxu0 %v31_v0  ;;  %v76_v2 = vld [vmem:[%s375_s3 + $0x78] sm:$0xff]  ;;  %v75_v4 = vld [vmem:[%s375_s3 + $0x70] sm:$0xff]  ;;  %v74_v5 = vld [vmem:[%s375_s3 + $0x68] sm:$0xff] }
   0x3   :  { %81 = vmatpush.msra.mxu1 %v76_v2  ;;  %v28_v6 = vld [vmem:[%s373_s1] sm:$0xff] }
   0x4   :  { %53 = vmatpush.msra.mxu0 %v30_v1  ;;  %v27_v7 = vld [vmem:[%s372_s0] sm:$0xff] }
   0x5   :  { %82 = vmatpush.msra.mxu1 %v75_v4  ;;  %v73_v8 = vld [vmem:[%s375_s3 + $0x60] sm:$0xff] }
   0x6   :  { %54 = vmatpush.msra.mxu0 %v29_v3 }
   0x7   :  { %83 = vmatpush.msra.mxu1 %v74_v5 }
   0x8   :  { %12 = vsyncpa [#allocation3], 0  ;;  %55 = vmatpush.msra.mxu0 %v28_v6  ;;  %v72_v9 = vld [vmem:[%s375_s3 + $0x58] sm:$0xff]  ;;  %v71_v10 = vld [vmem:[%s375_s3 + $0x50] sm:$0xff]  ;;  %s160_s28 = sshll.u32 %s379_s7, 4  ;;  %s161_s28 = int_to_ptr.hbm [resolvable:$true] %s160_s28 }
   0x9   :  { %169 = vmatmul.msk.f32.vlgmr.msra.gmra.mxu0 %vm36_vm0, %v27_v7  ;;  %84 = vmatpush.msra.mxu1 %v73_v8  ;;  %v70_v11 = vld [vmem:[%s375_s3 + $0x48] sm:$0xff]  ;;  %v69_v12 = vld [vmem:[%s375_s3 + $0x40] sm:$0xff]  ;;  %v68_v13 = vld [vmem:[%s375_s3 + $0x38] sm:$0xff] }
   0xa   :  { %v67_v14 = vld [vmem:[%s375_s3 + $0x30] sm:$0xff]  ;;  %v66_v15 = vld [vmem:[%s375_s3 + $0x28] sm:$0xff]  ;;  %v65_v16 = vld [vmem:[%s375_s3 + $0x20] sm:$0xff] }
   0xb   :  { %85 = vmatpush.msra.mxu1 %v72_v9  ;;  %v64_v17 = vld [vmem:[%s375_s3 + $0x18] sm:$0xff]  ;;  %v63_v18 = vld [vmem:[%s375_s3 + $0x10] sm:$0xff]  ;;  %v62_v19 = vld [vmem:[%s375_s3 + $0x8] sm:$0xff] }
   0xc   :  { %v61_v20 = vld [vmem:[%s375_s3] sm:$0xff]  ;;  %v117_v21 = vld [vmem:[%s377_s5 + $0x78] sm:$0xff]  ;;  %v116_v22 = vld [vmem:[%s377_s5 + $0x70] sm:$0xff] }
   0xd   :  { %86 = vmatpush.msra.mxu1 %v71_v10  ;;  %122 = vmatpush.msra.mxu2 %v117_v21  ;;  %v115_v23 = vld [vmem:[%s377_s5 + $0x68] sm:$0xff]  ;;  %v114_v24 = vld [vmem:[%s377_s5 + $0x60] sm:$0xff]  ;;  %v113_v25 = vld [vmem:[%s377_s5 + $0x58] sm:$0xff] }
   0xe   :  { %v112_v26 = vld [vmem:[%s377_s5 + $0x50] sm:$0xff]  ;;  %v111_v27 = vld [vmem:[%s377_s5 + $0x48] sm:$0xff]  ;;  %v110_v28 = vld [vmem:[%s377_s5 + $0x40] sm:$0xff] }
   0xf   :  { %87 = vmatpush.msra.mxu1 %v70_v11  ;;  %123 = vmatpush.msra.mxu2 %v116_v22  ;;  %v109_v29 = vld [vmem:[%s377_s5 + $0x38] sm:$0xff]  ;;  %v108_v30 = vld [vmem:[%s377_s5 + $0x30] sm:$0xff]  ;;  %v107_v31 = vld [vmem:[%s377_s5 + $0x28] sm:$0xff] }
  0x10   :  { %v171_v32 = vld [vmem:[%s374_s2] ss:$0 sm:$0xff]  ;;  %v105_v37 = vld [vmem:[%s377_s5 + $0x18] sm:$0xff]  ;;  %v104_v38 = vld [vmem:[%s377_s5 + $0x10] sm:$0xff] }
  0x11   :  { %88 = vmatpush.msra.mxu1 %v69_v12  ;;  %124 = vmatpush.msra.mxu2 %v115_v23  ;;  %v106_v36 = vld [vmem:[%s377_s5 + $0x20] sm:$0xff]  ;;  %v103_v39 = vld [vmem:[%s377_s5 + $0x8] sm:$0xff] }
  0x12   :  { %v102_v40 = vld [vmem:[%s377_s5] sm:$0xff] }
  0x13   :  { %89 = vmatpush.msra.mxu1 %v68_v13  ;;  %125 = vmatpush.msra.mxu2 %v114_v24  ;;  %v172_v41 = vld [vmem:[%s376_s4] ss:$0 sm:$0xff]  ;;  %s208_s4 = smov [#allocation2]  }
  0x14   :  { %v173_v45 = vld [vmem:[%s378_s6] ss:$0 sm:$0xff]  ;;  %s158_s5 = sshll.u32 %s208_s4, 4  ;;  %s159_s5 = int_to_ptr.vmem [resolvable:$true] %s158_s5 }
  0x15   :  { %90 = vmatpush.msra.mxu1 %v67_v14  ;;  %126 = vmatpush.msra.mxu2 %v113_v25 }
  0x17   :  { %91 = vmatpush.msra.mxu1 %v66_v15  ;;  %127 = vmatpush.msra.mxu2 %v112_v26 }
  0x19   :  { %92 = vmatpush.msra.mxu1 %v65_v16  ;;  %128 = vmatpush.msra.mxu2 %v111_v27 }
  0x1b   :  { %93 = vmatpush.msra.mxu1 %v64_v17  ;;  %129 = vmatpush.msra.mxu2 %v110_v28 }
  0x1d   :  { %94 = vmatpush.msra.mxu1 %v63_v18  ;;  %130 = vmatpush.msra.mxu2 %v109_v29 }
  0x1f   :  { %95 = vmatpush.msra.mxu1 %v62_v19  ;;  %131 = vmatpush.msra.mxu2 %v108_v30 }
  0x21   :  { %96 = vmatpush.msra.mxu1 %v61_v20  ;;  %132 = vmatpush.msra.mxu2 %v107_v31 }
  0x23   :  { %133 = vmatpush.msra.mxu2 %v106_v36 }
  0x25   :  { %134 = vmatpush.msra.mxu2 %v105_v37 }
  0x27   :  { %135 = vmatpush.msra.mxu2 %v104_v38 }
  0x29   :  { %136 = vmatpush.msra.mxu2 %v103_v39 }
  0x2b   :  { %137 = vmatpush.msra.mxu2 %v102_v40 }
  0x86   :  { %v57_v33 = vpop.f32.mrf.mxu0 }
  0x87   :  { %v58_v34 = vadd.f32 %v171_v32, %v57_v33 }
  0x89   :  { %174 = vtanh.f32 %v58_v34 }
  0x8f   :  { %v175_v35 = vpop.eup %174 }
  0x90   :  { %97 = vmatmul.f32.vlgmr.msra.gmra.mxu1 %v175_v35 }
 0x10d   :  { %v98_v42 = vpop.f32.mrf.mxu1 }
 0x10e   :  { %v99_v43 = vadd.f32 %v172_v41, %v98_v42 }
 0x110   :  { %176 = vtanh.f32 %v99_v43 }
 0x116   :  { %v177_v44 = vpop.eup %176 }
 0x117   :  { %138 = vmatmul.f32.vlgmr.msra.gmra.mxu2 %v177_v44 }
 0x19a   :  { %v139_v46 = vpop.f32.mrf.mxu2 }
 0x19b   :  { %v140_v47 = vadd.f32 %v173_v45, %v139_v46 }
 0x19d   :  { %142 = vmax.xlane.f32.xlu0 %v140_v47 }
 0x210   :  { %v143_v48 = vpop.xlane.xlu0 %142 }
 0x211   :  { %v144_v49 = vsub.f32 %v140_v47, %v143_v48 }
 0x213   :  { %v145_v50 = vmul.f32 1.442695, %v144_v49 }
 0x215   :  { %178 = vpow2.f32 %v145_v50 }
 0x21b   :  { %v179_v51 = vpop.eup %178 }
 0x21c   :  { %147 = vadd.xlane.f32.xlu0 %v179_v51 }
 0x28f   :  { %v148_v52 = vpop.xlane.xlu0 %147 }
 0x290   :  { %180 = vlog2.f32 %v148_v52 }
 0x296   :  { %v181_v53 = vpop.eup %180 }
 0x297   :  { %v150_v54 = vmul.f32 0.6931472, %v181_v53 }
 0x299   :  { %v151_v55 = vsub.f32 %v144_v49, %v150_v54 }
 0x29b   :  { %152 = vst [vmem:[#allocation2] sm:$0xff] %v151_v55 }
 0x29c   :  { %163 = dma.vmem_to_hbm [thread:$0]  %s159_s5, 128, %s161_s28, [#allocation3]  }
 0x29d   :  { %206 = dma.done.wait [#allocation3], 128  }
 0x29e   :  { %207 = vsyncadd [#allocation3], 4294967168 }
 0x29f   :  { %168 = vsyncpa [#allocation3], 1 }

</bundles_post_ra>
